<compile_context>
chip_gen: v5e
topology: v5e:2x2
jax: 0.10.0
libtpu: 0.0.40
codegen_flags: <defaults>
</compile_context>

<pallas_src>
import jax
import jax.numpy as jnp
from jax.experimental import pallas as pl
from jax.experimental.pallas import tpu as pltpu


def _round_up(n, m):
    return ((n + m - 1) // m) * m


def _cdiv(a, b):
    return (a + b - 1) // b


def _ffn_kernel(x_ref, w1t_ref, b1_ref, w2t_ref, b2_ref, o_ref):
    # x_ref: (TM, W) token tile. w1t/w2t: (W, W) bf16, already (in, out)-ordered.
    # First 1x1 conv (= per-token matmul): bf16 operands, f32 accumulation on MXU.
    h = jnp.dot(x_ref[...].astype(jnp.bfloat16), w1t_ref[...],
                preferred_element_type=jnp.float32)
    h = jnp.maximum(h + b1_ref[...], 0.0)                       # bias + ReLU in f32
    # Second 1x1 conv.
    y = jnp.dot(h.astype(jnp.bfloat16), w2t_ref[...],
                preferred_element_type=jnp.float32)
    # bias + residual in f32; x re-read here (short live range); single final cast.
    o_ref[...] = (y + b2_ref[...] + x_ref[...].astype(jnp.float32)).astype(o_ref.dtype)


def _vmem_footprint_bytes(tm, w, act_itemsize):
    act = 2 * 2 * tm * w * act_itemsize        # x + out tiles, double-buffered
    wgt = 2 * 2 * w * w * 2                    # W1^T + W2^T bf16, double-buffered
    bias = 2 * 2 * w * 4
    return act + wgt + bias


@jax.jit
def pointwise_feedforward(inputs, w1, b1, w2, b2):
    """inputs: (B, L, H); w1, w2: (H_out, H_in) conv1d-1x1 weights; b1, b2: (H,)."""
    B, L, H = inputs.shape
    n_tokens = B * L

    # ---- small-H lane packing: 128/H tokens per 128-lane row (free reshape) ----
    pack = 1
    if H < 128 and 128 % H == 0 and n_tokens % (128 // H) == 0:
        pack = 128 // H
    W = H * pack                    # row width seen by the kernel
    rows = n_tokens // pack
    x2d = inputs.reshape(rows, W)   # contiguous row-major reshape, no copy

    # ---- weight / bias prep (glue): transpose, (block-)diagonalize, cast bf16 ----
    w1t = w1.T.astype(jnp.float32)
    w2t = w2.T.astype(jnp.float32)
    if pack > 1:
        eye = jnp.eye(pack, dtype=jnp.float32)
        w1t = jnp.kron(eye, w1t)                       # (W, W) block-diagonal
        w2t = jnp.kron(eye, w2t)
        b1v = jnp.tile(b1.astype(jnp.float32), pack)
        b2v = jnp.tile(b2.astype(jnp.float32), pack)
    else:
        b1v = b1.astype(jnp.float32)
        b2v = b2.astype(jnp.float32)
    w1t = w1t.astype(jnp.bfloat16)
    w2t = w2t.astype(jnp.bfloat16)
    b1r = b1v.reshape(1, W)
    b2r = b2v.reshape(1, W)

    # ---- generation-aware VMEM budget ----
    try:
        vmem_phys = int(pltpu.get_tpu_info().vmem_capacity_bytes)
    except Exception:
        vmem_phys = 64 * 2**20          # conservative default (v7x per-core VMEM)
    vmem_budget = min(int(0.75 * vmem_phys), 100 * 2**20)   # ~48 MiB v7x, ~96 MiB v5e/v6e

    # ---- token-tile selection: ~4 MiB of activation per buffer per step ----
    itemsize = jnp.dtype(inputs.dtype).itemsize
    tm = max(8, _round_up((4 * 2**20) // max(W * itemsize, 1), 8))
    # keep >= 4 grid steps when the row count allows (2-TC sharding + overlap)
    tm = min(tm, max(8, _round_up(_cdiv(rows, 4), 8)))
    # never exceed the (8-aligned) row count
    tm = min(tm, _round_up(rows, 8))
    if rows <= 8:
        tm = rows                      # full-extent block: no 8-divisibility needed
    while tm > 8 and _vmem_footprint_bytes(tm, W, itemsize) > vmem_budget:
        tm = max(8, _round_up(tm // 2, 8))
    grid = _cdiv(rows, tm)

    vmem_limit = int(min(
        vmem_budget,
        max(32 * 2**20, int(1.25 * _vmem_footprint_bytes(tm, W, itemsize)))))

    out2d = pl.pallas_call(
        _ffn_kernel,
        out_shape=jax.ShapeDtypeStruct((rows, W), inputs.dtype),
        grid_spec=pltpu.PrefetchScalarGridSpec(
            num_scalar_prefetch=0,
            grid=(grid,),
            in_specs=[
                pl.BlockSpec((tm, W), lambda i: (i, 0)),   # x tile (partial tail masked)
                pl.BlockSpec((W, W), lambda i: (0, 0)),    # W1^T (VMEM resident)
                pl.BlockSpec((1, W), lambda i: (0, 0)),    # b1
                pl.BlockSpec((W, W), lambda i: (0, 0)),    # W2^T (VMEM resident)
                pl.BlockSpec((1, W), lambda i: (0, 0)),    # b2
            ],
            out_specs=pl.BlockSpec((tm, W), lambda i: (i, 0)),
        ),
        compiler_params=pltpu.CompilerParams(
            dimension_semantics=("parallel",),
            vmem_limit_bytes=vmem_limit),
    )(x2d, w1t, b1r, w2t, b2r)

    return out2d.reshape(B, L, H)


def _reference(inputs, w1, b1, w2, b2):
    # Pure-JAX f32 reference of the PyTorch forward (eval mode).
    h = jnp.maximum(jnp.einsum("blh,oh->blo", inputs, w1) + b1, 0.0)
    y = jnp.einsum("blh,oh->blo", h, w2) + b2
    return y + inputs


if __name__ == "__main__":
    B, L, H = 2, 8, 32   # batch, seq, hidden_units
    key = jax.random.PRNGKey(0)
    k_x, k_w1, k_b1, k_w2, k_b2 = jax.random.split(key, 5)

    x = jax.random.normal(k_x, (B, L, H), dtype=jnp.float32)
    # Conv1d(H, H, kernel_size=1) weights: (out, in, 1) -> use (out, in).
    w1 = jax.random.normal(k_w1, (H, H), dtype=jnp.float32) * 0.05
    b1 = jax.random.normal(k_b1, (H,), dtype=jnp.float32) * 0.05
    w2 = jax.random.normal(k_w2, (H, H), dtype=jnp.float32) * 0.05
    b2 = jax.random.normal(k_b2, (H,), dtype=jnp.float32) * 0.05

    # Small-H packed path (H=32 -> 4 tokens per 128-lane row).
    out = pointwise_feedforward(x, w1, b1, w2, b2)
    jax.block_until_ready(out)
    ref = _reference(x, w1, b1, w2, b2)
    assert out.shape == x.shape == (B, L, H)
    # bf16 matmul operands with f32 accumulation -> loosened tolerance.
    assert jnp.allclose(out, ref, atol=2e-2, rtol=2e-2), "mismatch vs reference"

    # Ragged token count (21 tokens, unpacked path, masked partial tail block).
    xr = jax.random.normal(k_x, (3, 7, H), dtype=jnp.float32)
    outr = pointwise_feedforward(xr, w1, b1, w2, b2)
    jax.block_until_ready(outr)
    refr = _reference(xr, w1, b1, w2, b2)
    assert outr.shape == xr.shape
    assert jnp.allclose(outr, refr, atol=2e-2, rtol=2e-2), "ragged mismatch"

    # H = 128 path: no packing, multi-step parallel grid (exercises pipelining).
    H2, B2, L2 = 128, 4, 64
    kx2, kw3, kb3, kw4, kb4 = jax.random.split(jax.random.PRNGKey(0), 5)
    x2 = jax.random.normal(kx2, (B2, L2, H2), dtype=jnp.float32)
    w3 = jax.random.normal(kw3, (H2, H2), dtype=jnp.float32) * 0.05
    b3 = jax.random.normal(kb3, (H2,), dtype=jnp.float32) * 0.05
    w4 = jax.random.normal(kw4, (H2, H2), dtype=jnp.float32) * 0.05
    b4 = jax.random.normal(kb4, (H2,), dtype=jnp.float32) * 0.05
    out2 = pointwise_feedforward(x2, w3, b3, w4, b4)
    jax.block_until_ready(out2)
    ref2 = _reference(x2, w3, b3, w4, b4)
    assert out2.shape == x2.shape
    assert jnp.allclose(out2, ref2, atol=2e-2, rtol=2e-2), "H=128 mismatch"

    print("KERNEL_OK")
</pallas_src>

<mosaic_0001>
module attributes {stable_mosaic.version = 11 : i64} {
  func.func @_ffn_kernel(%arg0: i32, %arg1: memref<4x128xf32, #tpu.memory_space<vmem>>, %arg2: memref<128x128xbf16, #tpu.memory_space<vmem>>, %arg3: memref<1x128xf32, #tpu.memory_space<vmem>>, %arg4: memref<128x128xbf16, #tpu.memory_space<vmem>>, %arg5: memref<1x128xf32, #tpu.memory_space<vmem>>, %arg6: memref<4x128xf32, #tpu.memory_space<vmem>>) attributes {dimension_semantics = [#tpu.dimension_semantics<parallel>], iteration_bounds = array<i64: 1>, scalar_prefetch = 0 : i64, scratch_operands = 0 : i64, tpu.core_type = #tpu.core_type<tc>, window_params = [{transform_indices = @transform_0, window_bounds = array<i64: 4, 128>}, {pipeline_mode = #tpu.pipeline_mode<synchronous>, transform_indices = @transform_1, window_bounds = array<i64: 128, 128>}, {pipeline_mode = #tpu.pipeline_mode<synchronous>, transform_indices = @transform_2, window_bounds = array<i64: 1, 128>}, {pipeline_mode = #tpu.pipeline_mode<synchronous>, transform_indices = @transform_3, window_bounds = array<i64: 128, 128>}, {pipeline_mode = #tpu.pipeline_mode<synchronous>, transform_indices = @transform_4, window_bounds = array<i64: 1, 128>}, {transform_indices = @transform_5, window_bounds = array<i64: 4, 128>}]} {
    %c0 = arith.constant 0 : index
    %c0_0 = arith.constant 0 : index
    %0 = vector.load %arg1[%c0, %c0_0] : memref<4x128xf32, #tpu.memory_space<vmem>>, vector<4x128xf32>
    %1 = arith.truncf %0 : vector<4x128xf32> to vector<4x128xbf16>
    %c0_1 = arith.constant 0 : index
    %c0_2 = arith.constant 0 : index
    %2 = vector.load %arg2[%c0_1, %c0_2] : memref<128x128xbf16, #tpu.memory_space<vmem>>, vector<128x128xbf16>
    %cst = arith.constant dense<0.000000e+00> : vector<4x128xf32>
    %3 = tpu.matmul %1, %2, %cst {dimension_numbers = #tpu.dot_dimension_numbers<[1], [0], [0], [1], [0, 0, 1, 1], [], []>} : vector<4x128xbf16>, vector<128x128xbf16>, vector<4x128xf32> -> vector<4x128xf32>
    %c0_3 = arith.constant 0 : index
    %c0_4 = arith.constant 0 : index
    %4 = vector.load %arg3[%c0_3, %c0_4] : memref<1x128xf32, #tpu.memory_space<vmem>>, vector<1x128xf32>
    %5 = vector.broadcast %4 : vector<1x128xf32> to vector<4x128xf32>
    %6 = arith.addf %3, %5 : vector<4x128xf32>
    %cst_5 = arith.constant 0.000000e+00 : f32
    %7 = vector.broadcast %cst_5 : f32 to vector<4x128xf32>
    %8 = arith.maximumf %6, %7 : vector<4x128xf32>
    %9 = arith.truncf %8 : vector<4x128xf32> to vector<4x128xbf16>
    %c0_6 = arith.constant 0 : index
    %c0_7 = arith.constant 0 : index
    %10 = vector.load %arg4[%c0_6, %c0_7] : memref<128x128xbf16, #tpu.memory_space<vmem>>, vector<128x128xbf16>
    %cst_8 = arith.constant dense<0.000000e+00> : vector<4x128xf32>
    %11 = tpu.matmul %9, %10, %cst_8 {dimension_numbers = #tpu.dot_dimension_numbers<[1], [0], [0], [1], [0, 0, 1, 1], [], []>} : vector<4x128xbf16>, vector<128x128xbf16>, vector<4x128xf32> -> vector<4x128xf32>
    %c0_9 = arith.constant 0 : index
    %c0_10 = arith.constant 0 : index
    %12 = vector.load %arg5[%c0_9, %c0_10] : memref<1x128xf32, #tpu.memory_space<vmem>>, vector<1x128xf32>
    %13 = vector.broadcast %12 : vector<1x128xf32> to vector<4x128xf32>
    %14 = arith.addf %11, %13 : vector<4x128xf32>
    %c0_11 = arith.constant 0 : index
    %c0_12 = arith.constant 0 : index
    %15 = vector.load %arg1[%c0_11, %c0_12] : memref<4x128xf32, #tpu.memory_space<vmem>>, vector<4x128xf32>
    %16 = arith.addf %14, %15 : vector<4x128xf32>
    %c0_13 = arith.constant 0 : index
    %c0_14 = arith.constant 0 : index
    %17 = vector.load %arg6[%c0_13, %c0_14] : memref<4x128xf32, #tpu.memory_space<vmem>>, vector<4x128xf32>
    tpu.vector_store %arg6[%c0_13, %c0_14], %16 {strides = array<i32>} : memref<4x128xf32, #tpu.memory_space<vmem>>, vector<4x128xf32>,
    return
  }
  func.func @transform_0(%arg0: i32) -> (i32, i32) {
    %c0_i32 = arith.constant 0 : i32
    %c0_i32_0 = arith.constant 0 : i32
    return %arg0, %c0_i32 : i32, i32
  }
  func.func @transform_1(%arg0: i32) -> (i32, i32) {
    %c0_i32 = arith.constant 0 : i32
    %c0_i32_0 = arith.constant 0 : i32
    %c0_i32_1 = arith.constant 0 : i32
    return %c0_i32, %c0_i32_0 : i32, i32
  }
  func.func @transform_2(%arg0: i32) -> (i32, i32) {
    %c0_i32 = arith.constant 0 : i32
    %c0_i32_0 = arith.constant 0 : i32
    %c0_i32_1 = arith.constant 0 : i32
    return %c0_i32, %c0_i32_0 : i32, i32
  }
  func.func @transform_3(%arg0: i32) -> (i32, i32) {
    %c0_i32 = arith.constant 0 : i32
    %c0_i32_0 = arith.constant 0 : i32
    %c0_i32_1 = arith.constant 0 : i32
    return %c0_i32, %c0_i32_0 : i32, i32
  }
  func.func @transform_4(%arg0: i32) -> (i32, i32) {
    %c0_i32 = arith.constant 0 : i32
    %c0_i32_0 = arith.constant 0 : i32
    %c0_i32_1 = arith.constant 0 : i32
    return %c0_i32, %c0_i32_0 : i32, i32
  }
  func.func @transform_5(%arg0: i32) -> (i32, i32) {
    %c0_i32 = arith.constant 0 : i32
    %c0_i32_0 = arith.constant 0 : i32
    return %arg0, %c0_i32 : i32, i32
  }
}

</mosaic_0001>

<bundles_post_ra>
// kernel: tile.13
= control target key start
LH: loop header
LB: loop body
LE: loop exit
PB: predicated region body
PF: predicated region fallthrough
CT: control target
= control target key end

     0   :  { %s22_s0 = inlined_call_operand.vmem [shape: f32[32], index: 0, kind: input, shape index: {}]   ;;  %s23_s1 = inlined_call_operand.vmem [shape: f32[4,32], index: 1, kind: output, shape index: {}]  }
   0x1   :  { %v4_v0 = vld [vmem:[%s22_s0] ss:$0 sm:$0xff] }
   0x2   :  { %5 = vst [vmem:[%s23_s1] sm:$0xf] %v4_v0 }

// kernel: tile.18
= control target key start
LH: loop header
LB: loop body
LE: loop exit
PB: predicated region body
PF: predicated region fallthrough
CT: control target
= control target key end

     0   :  { %s37_s8 = smov 32   ;;  %s38_s9 = smov 64   ;;  %vm7_vm0 = vcmask 261120   ;;  %vm13_vm1 = vcmask 1048320   ;;  %vm19_vm2 = vcmask 785920   ;;  %vm25_vm3 = vcmask 523520   ;;  %s55_s0 = inlined_call_operand.vmem [shape: f32[4,32], index: 0, kind: input, shape index: {}]   ;;  %s56_s1 = inlined_call_operand.vmem [shape: f32[1,128], index: 1, kind: output, shape index: {}]  }
   0x1   :  { %v4_v0 = vld [vmem:[%s55_s0] sm:$0xf]  ;;  %s36_s0 = smov 96  }
   0x2   :  { %5 = vst [vmem:[#allocation1] sm:$0xf] %v4_v0 }
   0x9   :  { %v10_v1 = vld [vmem:[#allocation1 + $0x3] sm:$0x1]   ;;  %v22_v2 = vld [vmem:[#allocation1 + $0x1] sm:$0x1]   ;;  %v16_v3 = vld [vmem:[#allocation1 + $0x2] sm:$0x1]  }
   0xa   :  { %11 = vrot.lane.b32.xlu0 %v10_v1, %s36_s0  ;;  %23 = vrot.lane.b32.xlu1 %v22_v2, %s37_s8  ;;  %v6_v4 = vld [vmem:[#allocation1] sm:$0x1]  }
   0xb   :  { %8 = vst.msk [vmem:[#allocation0] sm:$0x1] %vm7_vm0, %v6_v4  }
  0x12   :  { %17 = vrot.lane.b32.xlu0 %v16_v3, %s38_s9 }
  0x7c   :  { %v12_v5 = vpop.permute.xlu0 %11   ;;  %v24_v6 = vpop.permute.xlu1 %23  }
  0x7d   :  { %14 = vst.msk [vmem:[#allocation0] sm:$0x1] %vm13_vm1, %v12_v5  }
  0x84   :  { %v18_v7 = vpop.permute.xlu0 %17  }
  0x85   :  { %20 = vst.msk [vmem:[#allocation0] sm:$0x1] %vm19_vm2, %v18_v7  }
  0x86   :  { %26 = vst.msk [vmem:[#allocation0] sm:$0x1] %vm25_vm3, %v24_v6  }
  0x8d   :  { %v29_v8 = vld [vmem:[#allocation0] sm:$0x1] }
  0x8e   :  { %32 = vst [vmem:[%s56_s1] sm:$0x1] %v29_v8 }

// kernel: pointwise_feedforward.1
= control target key start
LH: loop header
LB: loop body
LE: loop exit
PB: predicated region body
PF: predicated region fallthrough
CT: control target
= control target key end

     0   :  { %s364_s1 = inlined_call_operand.vmem [shape: bf16[128,128], index: 1, kind: input, shape index: {}]   ;;  %s365_s3 = inlined_call_operand.vmem [shape: bf16[128,128], index: 3, kind: input, shape index: {}]   ;;  %s366_s2 = inlined_call_operand.vmem [shape: f32[1,128], index: 2, kind: input, shape index: {}]   ;;  %s367_s0 = inlined_call_operand.vmem [shape: f32[4,128], index: 0, kind: input, shape index: {}]   ;;  %s368_s4 = inlined_call_operand.vmem [shape: f32[1,128], index: 4, kind: input, shape index: {}]   ;;  %s369_s5 = inlined_call_operand.vmem [shape: f32[4,128], index: 5, kind: output, shape index: {}]  }
   0x1   :  { %v263_v0 = vld [vmem:[%s364_s1 + $0x38] sm:$0xff]  ;;  %v262_v1 = vld [vmem:[%s364_s1 + $0x30] sm:$0xff]  ;;  %v261_v4 = vld [vmem:[%s364_s1 + $0x28] sm:$0xff] }
   0x2   :  { %90 = vmatpush.bf16.msra.mxu0 %v263_v0  ;;  %v271_v2 = vld [vmem:[%s365_s3 + $0x38] sm:$0xff]  ;;  %v270_v3 = vld [vmem:[%s365_s3 + $0x30] sm:$0xff]  ;;  %v269_v5 = vld [vmem:[%s365_s3 + $0x28] sm:$0xff] }
   0x3   :  { %173 = vmatpush.bf16.msra.mxu1 %v271_v2  ;;  %v260_v6 = vld [vmem:[%s364_s1 + $0x20] sm:$0xff]  ;;  %v259_v8 = vld [vmem:[%s364_s1 + $0x18] sm:$0xff]  ;;  %v258_v10 = vld [vmem:[%s364_s1 + $0x10] sm:$0xff] }
   0x4   :  { %v268_v7 = vld [vmem:[%s365_s3 + $0x20] sm:$0xff]  ;;  %v267_v9 = vld [vmem:[%s365_s3 + $0x18] sm:$0xff]  ;;  %v266_v11 = vld [vmem:[%s365_s3 + $0x10] sm:$0xff] }
   0x5   :  { %v257_v12 = vld [vmem:[%s364_s1 + $0x8] sm:$0xff]  ;;  %v256_v13 = vld [vmem:[%s364_s1] sm:$0xff] }
   0x6   :  { %91 = vmatpush.bf16.msra.mxu0 %v262_v1  ;;  %v20_v14 = vld [vmem:[%s367_s0] sm:$0xf]  ;;  %v265_v16 = vld [vmem:[%s365_s3 + $0x8] sm:$0xff] }
   0x7   :  { %174 = vmatpush.bf16.msra.mxu1 %v270_v3  ;;  %v21_v15 = vpack.c.bf16 %v20_v14, %v20_v14  ;;  %v264_v17 = vld [vmem:[%s365_s3] sm:$0xff] }
   0x8   :  { %v272_v18 = vld [vmem:[%s366_s2] ss:$0 sm:$0xff] }
   0x9   :  { %v273_v24 = vld [vmem:[%s368_s4] ss:$0 sm:$0xff] }
   0xa   :  { %92 = vmatpush.bf16.msra.mxu0 %v261_v4 }
   0xb   :  { %175 = vmatpush.bf16.msra.mxu1 %v269_v5 }
   0xe   :  { %93 = vmatpush.bf16.msra.mxu0 %v260_v6 }
   0xf   :  { %176 = vmatpush.bf16.msra.mxu1 %v268_v7 }
  0x12   :  { %94 = vmatpush.bf16.msra.mxu0 %v259_v8 }
  0x13   :  { %177 = vmatpush.bf16.msra.mxu1 %v267_v9 }
  0x16   :  { %95 = vmatpush.bf16.msra.mxu0 %v258_v10 }
  0x17   :  { %178 = vmatpush.bf16.msra.mxu1 %v266_v11 }
  0x1a   :  { %96 = vmatpush.bf16.msra.mxu0 %v257_v12 }
  0x1b   :  { %179 = vmatpush.bf16.msra.mxu1 %v265_v16 }
  0x1e   :  { %97 = vmatpush.bf16.msra.mxu0 %v256_v13 }
  0x1f   :  { %180 = vmatpush.bf16.msra.mxu1 %v264_v17 }
  0x21   :  { %98 = vmatmul.bf16.vlgmr.msra.gmra.mxu0 %v21_v15 }
  0x9e   :  { %v99_v19 = vpop.f32.mrf.mxu0 }
  0x9f   :  { %v100_v20 = vadd.f32 %v272_v18, %v99_v19 }
  0xa1   :  { %v103_v21 = vmax.f32 %v100_v20, 0.0 }
  0xa3   :  { %v104_v22 = vpack.c.bf16 %v103_v21, %v103_v21 }
  0xa5   :  { %181 = vmatmul.bf16.vlgmr.msra.gmra.mxu1 %v104_v22 }
  0xa6   :  { %v101_v23 = vpop.f32.mrf.mxu0 }
 0x122   :  { %v182_v25 = vpop.f32.mrf.mxu1 }
 0x123   :  { %v183_v26 = vadd.f32 %v273_v24, %v182_v25 }
 0x125   :  { %v186_v27 = vadd.f32 %v183_v26, %v20_v14 }
 0x127   :  { %187 = vst [vmem:[%s369_s5] sm:$0xf] %v186_v27 }
 0x12a   :  { %v184_v28 = vpop.f32.mrf.mxu1 }

</bundles_post_ra>
